<compile_context>
chip_gen: v5e
topology: v5e:2x2
jax: 0.10.0
libtpu: 0.0.40
codegen_flags: <defaults>
</compile_context>

<pallas_src>
import functools

import jax
import jax.numpy as jnp
from jax.experimental import pallas as pl
from jax.experimental.pallas import tpu as pltpu


def _round_up(v, m):
    return (v + m - 1) // m * m


def gcn_layer_kernel(adj_ref, h_ref, w_ref, b_ref, out_ref, acc_ref,
                     *, activation, nvalid):
    """One GraphConvolution layer tile-step:
         acc[i] += adj[i, k] @ (h[k] @ W)
       init at k == 0, epilogue (bias + relu / masked log_softmax) at k == last."""
    k = pl.program_id(1)

    @pl.when(k == 0)
    def _():
        acc_ref[...] = jnp.zeros_like(acc_ref)

    # support_k = h_k @ W   (f32 accumulate, rounded to bf16 for the adj pass)
    support = jnp.dot(h_ref[...], w_ref[...],
                      preferred_element_type=jnp.float32)
    acc_ref[...] += jnp.dot(adj_ref[...], support.astype(adj_ref.dtype),
                            preferred_element_type=jnp.float32)

    @pl.when(k == pl.num_programs(1) - 1)
    def _():
        y = acc_ref[...] + b_ref[...]
        if activation == "relu":
            out_ref[...] = jnp.maximum(y, 0.0).astype(out_ref.dtype)
        else:  # masked log_softmax over the first `nvalid` (real) columns
            cols = jax.lax.broadcasted_iota(jnp.int32, y.shape, 1)
            y = jnp.where(cols < nvalid, y, -1e30)
            m = jnp.max(y, axis=1, keepdims=True)
            shifted = y - m
            lse = jnp.log(jnp.sum(jnp.exp(shifted), axis=1, keepdims=True))
            out_ref[...] = (shifted - lse).astype(out_ref.dtype)


def gcn_layer(adj, h, w, b, *, activation, nvalid, out_dtype, tm=128, tk=128):
    n = adj.shape[0]
    fin = h.shape[1]
    fout = w.shape[1]
    grid = (n // tm, n // tk)

    kernel = functools.partial(gcn_layer_kernel,
                               activation=activation, nvalid=nvalid)
    return pl.pallas_call(
        kernel,
        out_shape=jax.ShapeDtypeStruct((n, fout), out_dtype),
        grid_spec=pltpu.PrefetchScalarGridSpec(
            num_scalar_prefetch=0,
            grid=grid,
            in_specs=[
                pl.BlockSpec((tm, tk), lambda i, k: (i, k)),     # adj row tile
                pl.BlockSpec((tk, fin), lambda i, k: (k, 0)),    # h contraction tile
                pl.BlockSpec((fin, fout), lambda i, k: (0, 0)),  # W (resident)
                pl.BlockSpec((1, fout), lambda i, k: (0, 0)),    # bias (resident)
            ],
            out_specs=pl.BlockSpec((tm, fout), lambda i, k: (i, 0)),
            scratch_shapes=[pltpu.VMEM((tm, fout), jnp.float32)],
        ),
        compiler_params=pltpu.CompilerParams(
            dimension_semantics=("parallel", "arbitrary"),
            vmem_limit_bytes=48 * 1024 * 1024,
        ),
    )(adj, h, w, b)


def gcn_forward(x, adj, params, *, nclass, tile=128):
    """Full GCN forward.  Pads N up to a tile multiple and nclass up to 128
    lanes (zero padding is exact for the matmuls; padded logit columns are
    masked inside the log_softmax and sliced off here)."""
    n = x.shape[0]
    npad = max(_round_up(n, tile), tile)
    nclass_pad = max(_round_up(nclass, 128), 128)

    # bf16 operands, f32 accumulation inside the kernels.
    adj_p = jnp.zeros((npad, npad), jnp.bfloat16).at[:n, :n].set(
        adj.astype(jnp.bfloat16))
    x_p = jnp.zeros((npad, x.shape[1]), jnp.bfloat16).at[:n, :].set(
        x.astype(jnp.bfloat16))

    w_gc1 = params["w_gc1"].astype(jnp.bfloat16)
    b_gc1 = params["b_gc1"].astype(jnp.float32)
    w_gc2 = jnp.zeros((params["w_gc2"].shape[0], nclass_pad),
                      jnp.bfloat16).at[:, :nclass].set(
        params["w_gc2"].astype(jnp.bfloat16))
    b_gc2 = jnp.zeros((1, nclass_pad), jnp.float32).at[:, :nclass].set(
        params["b_gc2"].astype(jnp.float32))

    # ---- layer 1: relu(adj @ (x @ W1) + b1) ----
    h1 = gcn_layer(adj_p, x_p, w_gc1, b_gc1,
                   activation="relu", nvalid=None,
                   out_dtype=jnp.bfloat16, tm=tile, tk=tile)

    # TODO(synk): F.dropout(x, training=self.training) — identity here (eval
    # mode); a training-mode forward needs pltpu.prng_seed/prng_random_bits.

    # ---- layer 2: log_softmax(adj @ (h1 @ W2) + b2, dim=1) ----
    out_p = gcn_layer(adj_p, h1, w_gc2, b_gc2,
                      activation="log_softmax", nvalid=nclass,
                      out_dtype=jnp.float32, tm=tile, tk=tile)

    return out_p[:n, :nclass]


def init_params(key, nfeat, nhid, nclass):
    """Deterministic synthetic parameter init (uniform, PyTorch-ish scale).
    Weights stored as (in_features, out_features)."""
    ks = jax.random.split(key, 4)

    def u(k, shape, fan_in):
        bound = 1.0 / jnp.sqrt(fan_in)
        return jax.random.uniform(k, shape, jnp.float32, -bound, bound)

    return {
        "w_gc1": u(ks[0], (nfeat, nhid), nfeat),
        "b_gc1": u(ks[1], (1, nhid), nfeat),
        "w_gc2": u(ks[2], (nhid, nclass), nhid),
        "b_gc2": u(ks[3], (1, nclass), nhid),
    }


def gcn_reference(x, adj, params):
    """Pure-JAX f32 reference of the PyTorch forward (eval mode)."""
    h = jnp.maximum(adj @ (x @ params["w_gc1"]) + params["b_gc1"], 0.0)
    logits = adj @ (h @ params["w_gc2"]) + params["b_gc2"]
    return jax.nn.log_softmax(logits, axis=1)


if __name__ == "__main__":
    # Small shapes consistent with the module: N nodes, dense adj, two GC layers.
    N, nfeat, nhid, nclass = 256, 64, 32, 10

    key = jax.random.PRNGKey(0)
    k_x, k_adj, k_params = jax.random.split(key, 3)

    x = jax.random.normal(k_x, (N, nfeat), jnp.float32)
    # symmetric, row-normalized dense adjacency with self loops
    a = jax.random.uniform(k_adj, (N, N), jnp.float32)
    a = (a + a.T) * 0.5 + jnp.eye(N, dtype=jnp.float32)
    adj = a / jnp.sum(a, axis=1, keepdims=True)

    params = init_params(k_params, nfeat, nhid, nclass)

    out = gcn_forward(x, adj, params, nclass=nclass)
    out = jax.block_until_ready(out)

    assert out.shape == (N, nclass) and out.dtype == jnp.float32
    # rows of log_softmax should exp-sum to ~1
    assert bool(jnp.all(jnp.abs(jnp.sum(jnp.exp(out), axis=1) - 1.0) < 1e-3))
    # close to the pure-JAX f32 reference (bf16 operands, f32 accumulation)
    ref = gcn_reference(x, adj, params)
    assert bool(jnp.max(jnp.abs(out - ref)) < 5e-2)
    print("KERNEL_OK")
</pallas_src>

<mosaic_0001>
module attributes {stable_mosaic.version = 11 : i64} {
  func.func @gcn_layer_kernel(%arg0: i32, %arg1: i32, %arg2: memref<128x128xbf16, #tpu.memory_space<vmem>>, %arg3: memref<128x64xbf16, #tpu.memory_space<vmem>>, %arg4: memref<64x32xbf16, #tpu.memory_space<vmem>>, %arg5: memref<1x32xf32, #tpu.memory_space<vmem>>, %arg6: memref<128x32xbf16, #tpu.memory_space<vmem>>, %arg7: memref<128x32xf32, #tpu.memory_space<vmem>>) attributes {dimension_semantics = [#tpu.dimension_semantics<parallel>, #tpu.dimension_semantics<arbitrary>], iteration_bounds = array<i64: 2, 2>, scalar_prefetch = 0 : i64, scratch_operands = 1 : i64, tpu.core_type = #tpu.core_type<tc>, window_params = [{transform_indices = @transform_0, window_bounds = array<i64: 128, 128>}, {transform_indices = @transform_1, window_bounds = array<i64: 128, 64>}, {pipeline_mode = #tpu.pipeline_mode<synchronous>, transform_indices = @transform_2, window_bounds = array<i64: 64, 32>}, {pipeline_mode = #tpu.pipeline_mode<synchronous>, transform_indices = @transform_3, window_bounds = array<i64: 1, 32>}, {transform_indices = @transform_4, window_bounds = array<i64: 128, 32>}]} {
    %c0_i32 = arith.constant 0 : i32
    %0 = arith.cmpi eq, %arg1, %c0_i32 : i32
    %1 = arith.extui %0 : i1 to i32
    %c0_i32_0 = arith.constant 0 : i32
    %2 = arith.cmpi ne, %1, %c0_i32_0 : i32
    scf.if %2 {
      %cst_12 = arith.constant 0.000000e+00 : f32
      %15 = vector.broadcast %cst_12 : f32 to vector<128x32xf32>
      %c0_13 = arith.constant 0 : index
      %c0_14 = arith.constant 0 : index
      %16 = vector.load %arg7[%c0_13, %c0_14] : memref<128x32xf32, #tpu.memory_space<vmem>>, vector<128x32xf32>
      tpu.vector_store %arg7[%c0_13, %c0_14], %15 {strides = array<i32>} : memref<128x32xf32, #tpu.memory_space<vmem>>, vector<128x32xf32>,
    } else {
    }
    %c0 = arith.constant 0 : index
    %c0_1 = arith.constant 0 : index
    %3 = vector.load %arg3[%c0, %c0_1] : memref<128x64xbf16, #tpu.memory_space<vmem>>, vector<128x64xbf16>
    %c0_2 = arith.constant 0 : index
    %c0_3 = arith.constant 0 : index
    %4 = vector.load %arg4[%c0_2, %c0_3] : memref<64x32xbf16, #tpu.memory_space<vmem>>, vector<64x32xbf16>
    %cst = arith.constant dense<0.000000e+00> : vector<128x32xf32>
    %5 = tpu.matmul %3, %4, %cst {dimension_numbers = #tpu.dot_dimension_numbers<[1], [0], [0], [1], [0, 0, 1, 1], [], []>} : vector<128x64xbf16>, vector<64x32xbf16>, vector<128x32xf32> -> vector<128x32xf32>
    %c0_4 = arith.constant 0 : index
    %c0_5 = arith.constant 0 : index
    %6 = vector.load %arg7[%c0_4, %c0_5] : memref<128x32xf32, #tpu.memory_space<vmem>>, vector<128x32xf32>
    %c0_6 = arith.constant 0 : index
    %c0_7 = arith.constant 0 : index
    %7 = vector.load %arg2[%c0_6, %c0_7] : memref<128x128xbf16, #tpu.memory_space<vmem>>, vector<128x128xbf16>
    %8 = arith.truncf %5 : vector<128x32xf32> to vector<128x32xbf16>
    %cst_8 = arith.constant dense<0.000000e+00> : vector<128x32xf32>
    %9 = tpu.matmul %7, %8, %cst_8 {dimension_numbers = #tpu.dot_dimension_numbers<[1], [0], [0], [1], [0, 0, 1, 1], [], []>} : vector<128x128xbf16>, vector<128x32xbf16>, vector<128x32xf32> -> vector<128x32xf32>
    %10 = arith.addf %6, %9 : vector<128x32xf32>
    %c0_9 = arith.constant 0 : index
    %c0_10 = arith.constant 0 : index
    %11 = vector.load %arg7[%c0_9, %c0_10] : memref<128x32xf32, #tpu.memory_space<vmem>>, vector<128x32xf32>
    tpu.vector_store %arg7[%c0_9, %c0_10], %10 {strides = array<i32>} : memref<128x32xf32, #tpu.memory_space<vmem>>, vector<128x32xf32>,
    %c1_i32 = arith.constant 1 : i32
    %12 = arith.cmpi eq, %arg1, %c1_i32 : i32
    %13 = arith.extui %12 : i1 to i32
    %c0_i32_11 = arith.constant 0 : i32
    %14 = arith.cmpi ne, %13, %c0_i32_11 : i32
    scf.if %14 {
      %c0_12 = arith.constant 0 : index
      %c0_13 = arith.constant 0 : index
      %15 = vector.load %arg7[%c0_12, %c0_13] : memref<128x32xf32, #tpu.memory_space<vmem>>, vector<128x32xf32>
      %c0_14 = arith.constant 0 : index
      %c0_15 = arith.constant 0 : index
      %16 = vector.load %arg5[%c0_14, %c0_15] : memref<1x32xf32, #tpu.memory_space<vmem>>, vector<1x32xf32>
      %17 = vector.broadcast %16 : vector<1x32xf32> to vector<128x32xf32>
      %18 = arith.addf %15, %17 : vector<128x32xf32>
      %cst_16 = arith.constant 0.000000e+00 : f32
      %19 = vector.broadcast %cst_16 : f32 to vector<128x32xf32>
      %20 = arith.maximumf %18, %19 : vector<128x32xf32>
      %21 = arith.truncf %20 : vector<128x32xf32> to vector<128x32xbf16>
      %c0_17 = arith.constant 0 : index
      %c0_18 = arith.constant 0 : index
      %22 = vector.load %arg6[%c0_17, %c0_18] : memref<128x32xbf16, #tpu.memory_space<vmem>>, vector<128x32xbf16>
      tpu.vector_store %arg6[%c0_17, %c0_18], %21 {strides = array<i32>} : memref<128x32xbf16, #tpu.memory_space<vmem>>, vector<128x32xbf16>,
    } else {
    }
    return
  }
  func.func @transform_0(%arg0: i32, %arg1: i32) -> (i32, i32) {
    %c0_i32 = arith.constant 0 : i32
    return %arg0, %arg1 : i32, i32
  }
  func.func @transform_1(%arg0: i32, %arg1: i32) -> (i32, i32) {
    %c0_i32 = arith.constant 0 : i32
    %c0_i32_0 = arith.constant 0 : i32
    return %arg1, %c0_i32 : i32, i32
  }
  func.func @transform_2(%arg0: i32, %arg1: i32) -> (i32, i32) {
    %c0_i32 = arith.constant 0 : i32
    %c0_i32_0 = arith.constant 0 : i32
    %c0_i32_1 = arith.constant 0 : i32
    return %c0_i32, %c0_i32_0 : i32, i32
  }
  func.func @transform_3(%arg0: i32, %arg1: i32) -> (i32, i32) {
    %c0_i32 = arith.constant 0 : i32
    %c0_i32_0 = arith.constant 0 : i32
    %c0_i32_1 = arith.constant 0 : i32
    return %c0_i32, %c0_i32_0 : i32, i32
  }
  func.func @transform_4(%arg0: i32, %arg1: i32) -> (i32, i32) {
    %c0_i32 = arith.constant 0 : i32
    %c0_i32_0 = arith.constant 0 : i32
    return %arg0, %c0_i32 : i32, i32
  }
}

</mosaic_0001>

<bundles_post_ra>
// kernel: tpu_custom_call.1
= control target key start
LH: loop header
LB: loop body
LE: loop exit
PB: predicated region body
PF: predicated region fallthrough
CT: control target
= control target key end

     0   :  { %9 = vsyncpa [#allocation4], 0  ;;  %s1357_s0 = inlined_call_operand.hbm [shape: bf16[256,256], index: 0, kind: input, shape index: {}]   ;;  %s1358_s1 = inlined_call_operand.vmem [shape: bf16[256,64], index: 1, kind: input, shape index: {}]   ;;  %s1359_s2 = inlined_call_operand.vmem [shape: bf16[64,32], index: 2, kind: input, shape index: {}]   ;;  %s1360_s3 = inlined_call_operand.vmem [shape: f32[1,32], index: 3, kind: input, shape index: {}]   ;;  %s1361_s4 = inlined_call_operand.vmem [shape: bf16[256,32], index: 4, kind: output, shape index: {}]  }
   0x1   :  { %11 = vsyncpa [#allocation4 + $0x1], 0  ;;  %s1138_s15 = smov 0   ;;  %s1140_s16 = smov 0  }
   0x2   :  { %s1142_s17 = smov 0   ;;  %s1144_s18 = smov 0  }
   0x3   :  { %s1146_s19 = smov 0   ;;  %s1148_s20 = smov 0  }
   0x4   :  { %s1150_s21 = smov 0   ;;  %s1152_s22 = smov 0  }
   0x5 LB: > { %s796_s23 = sadd.s32 4294967295, %s1107_s22   ;;  %s26_s24 = sadd.s32 1, %s1099_s20  ;;  %s1107_s22 = sphi %s1152_s22, %s17_s22   ;;  %s1103_s21 = sphi %s1150_s21, %s1373_s21   ;;  %s1099_s20 = sphi %s1148_s20, %s1372_s20   ;;  %s1095_s19 = sphi %s1146_s19, %s1371_s19   ;;  %s1091_s18 = sphi %s1144_s18, %s1370_s18   ;;  %s1087_s17 = sphi %s1142_s17, %s1369_s17   ;;  %s1083_s16 = sphi %s1140_s16, %s1368_s16   ;;  %s1079_s15 = sphi %s1138_s15, %s1367_s15  }
   0x6   : > { %p27_p0 = scmp.ge.s32.totalorder %s26_s24, 2  ;;  %s29_s25 = sadd.s32 1, %s1103_s21 }
   0x7   : > { %s38_s26 = sadd.s32 1, %s1087_s17  ;;  %p45_p1 = scmp.ne.s32.totalorder %s1087_s17, %s1083_s16 }
   0x8   : > { %s1375_s24 = smov (%p27_p0, %s26_s24), 0  ;;  %s1377_s25 = smov (!%p27_p0, %s29_s25), %s1103_s21 }
   0x9   : > { %s34_s27 = ssub.s32 %s1099_s20, %s1375_s24  ;;  %p46_p2 = scmp.eq.s32.totalorder %s1107_s22, 0 }
   0xa   : > { %p31_p3 = scmp.ge.s32.totalorder %s1377_s25, 2  ;;  %p51_p4 = scmp.ne.s32.totalorder %s1083_s16, %s1079_s15 }
   0xb   : > { %p1189_p5 = por %p46_p2, %p45_p1  ;;  %p52_p6 = scmp.eq.s32.totalorder %s796_s23, 0 }
   0xc   : > { %s1379_s25 = smov (%p31_p3, %s1377_s25), 0  ;;  %p941_p8 = scmp.lt.s32.totalorder %s1107_s22, 4 }
   0xd   : > { %1364 = sst [smem:[#allocation6_spill]] %s1379_s25  ;;  %p1195_p7 = por %p52_p6, %p51_p4 }
   0xe   : > { %s33_s30 = ssub.s32 %s1103_s21, %s1379_s25  ;;  %s175_s6 = sand.u32 1, %s1087_s17  }
   0xf   : > { %s35_s5 = sor.u32 %s34_s27, %s33_s30  ;;  %s800_s7 = sshll.u32 %s175_s6, 6 }
  0x10   : > { %p36_p9 = scmp.eq.s32.totalorder %s35_s5, 0  ;;  %s902_s8 = sshll.u32 %s1103_s21, 5 }
  0x11   : > { %s184_s10 = sadd.s32 %s1099_s20, %s902_s8  ;;  %s179_s12 = scalar_lea.vmem [#allocation3], %s800_s7 }
  0x12   : > { %s1205_s9 = scalar_select %p36_p9, %s1087_s17, %s38_s26  }
  0x13   : > { %s803_s11 = sshll.u32 %s184_s10, 2  ;;  %s189_s13 = sshll.u32 %s179_s12, 4  ;;  %s190_s13 = int_to_ptr.vmem [resolvable:$true] %s189_s13 }
  0x14   : > { %s186_s23 = scalar_lea.hbm %s1357_s0, %s803_s11  ;;  %p938_p10 = pnand %p941_p8, %p1189_p5 }
  0x15   : > { %s187_s25 = sshll.u32 %s186_s23, 4  ;;  %p804_p11 = scmp.ge.s32.totalorder %s1107_s22, 1  ;;  %s188_s25 = int_to_ptr.hbm [resolvable:$true] %s187_s25 }
  0x16   : > { %s176_s27 = scalar_lea.sflag [#allocation4], %s175_s6  ;;  %s1109_s30 = smov 128  }
  0x17   : > { %s1110_s26 = smov 64   ;;  %s1111_s5 = smov 4  }
  0x18   : > { %940 = dma.hbm_to_vmem [thread:$0]  (!%p938_p10), %s188_s25, 1024, %s190_s13, %s176_s27, %s1109_s30, %s1110_s26, %s1111_s5  }
  0x19   : > { %p206_p12 = scmp.lt.s32.totalorder %s1107_s22, 5 }
  0x1b   : > { %p207_p13 = pnand %p804_p11, %p206_p12 }
  0x1c   : > { %s212_s7 = sand.u32 (!%p207_p13), 1, %s1083_s16  }
  0x1d   : > { %210 = sbr.rel (%p207_p13) target bundleno = 513 (0x201), region = 36  ;;  %s805_s8 = sshll.u32 (!%p207_p13), %s212_s7, 6 }
  0x1e   : > { %s213_s10 = scalar_lea.sflag (!%p207_p13), [#allocation4], %s212_s7  ;;  %s1218_s11 = scalar_lea.vmem (!%p207_p13), [#allocation3], %s805_s8 }
  0x22   : > { %1074 = dma.done.wait (%p1195_p7), %s213_s10, 1024  }
  0x23   : > { %1076 = vsyncadd (%p1195_p7), %s213_s10, 4294966272  ;;  %s806_s28 = sshll.u32 %s1091_s18, 4  ;;  %s808_s6 = sshll.u32 %s1095_s19, 4 }
  0x24   : > { %p249_p0 = scmp.lt.s32.totalorder %s806_s28, 31  ;;  %p255_p1 = scmp.lt.s32.totalorder %s808_s6, 31 }
  0x25   : > { %p810_p2 = scmp.ne.s32.totalorder %s1091_s18, 0 }
  0x26   : > { %s1381_s28 = smov (!%p249_p0, %s806_s28), 31  ;;  %s1383_s6 = smov (!%p255_p1, %s808_s6), 31 }
  0x27   : > { %s807_s25 = sshll.u32 %s1381_s28, 2  ;;  %s809_s15 = sshll.u32 %s1383_s6, 2 }
  0x28   : > { %s1229_s14 = scalar_lea.vmem %s1358_s1, %s807_s25  ;;  %s1234_s29 = scalar_lea.vmem %s1361_s4, %s809_s15 }
  0x29   : > { %264 = sbr.rel (%p810_p2) target bundleno = 63 (0x3f), region = 44 }
  0x2e   : > { %vm265_vm0 = vcmask 261120   ;;  %v1112_v0 = vmov 0.0  }
  0x2f   : > { %266 = vst.msk [vmem:[#allocation2] sm:$0xff] %vm265_vm0, %v1112_v0 }
  0x30   : > { %267 = vst.msk [vmem:[#allocation2 + $0x8] sm:$0xff] %vm265_vm0, %v1112_v0 }
  0x31   : > { %268 = vst.msk [vmem:[#allocation2 + $0x10] sm:$0xff] %vm265_vm0, %v1112_v0 }
  0x32   : > { %269 = vst.msk [vmem:[#allocation2 + $0x18] sm:$0xff] %vm265_vm0, %v1112_v0 }
  0x33   : > { %270 = vst.msk [vmem:[#allocation2 + $0x20] sm:$0xff] %vm265_vm0, %v1112_v0 }
  0x34   : > { %271 = vst.msk [vmem:[#allocation2 + $0x28] sm:$0xff] %vm265_vm0, %v1112_v0 }
  0x35   : > { %272 = vst.msk [vmem:[#allocation2 + $0x30] sm:$0xff] %vm265_vm0, %v1112_v0 }
  0x36   : > { %273 = vst.msk [vmem:[#allocation2 + $0x38] sm:$0xff] %vm265_vm0, %v1112_v0 }
  0x37   : > { %274 = vst.msk [vmem:[#allocation2 + $0x40] sm:$0xff] %vm265_vm0, %v1112_v0 }
  0x38   : > { %275 = vst.msk [vmem:[#allocation2 + $0x48] sm:$0xff] %vm265_vm0, %v1112_v0 }
  0x39   : > { %276 = vst.msk [vmem:[#allocation2 + $0x50] sm:$0xff] %vm265_vm0, %v1112_v0 }
  0x3a   : > { %277 = vst.msk [vmem:[#allocation2 + $0x58] sm:$0xff] %vm265_vm0, %v1112_v0 }
  0x3b   : > { %278 = vst.msk [vmem:[#allocation2 + $0x60] sm:$0xff] %vm265_vm0, %v1112_v0 }
  0x3c   : > { %279 = vst.msk [vmem:[#allocation2 + $0x68] sm:$0xff] %vm265_vm0, %v1112_v0 }
  0x3d   : > { %280 = vst.msk [vmem:[#allocation2 + $0x70] sm:$0xff] %vm265_vm0, %v1112_v0 }
  0x3e   : > { %281 = vst.msk [vmem:[#allocation2 + $0x78] sm:$0xff] %vm265_vm0, %v1112_v0 }
  0x3f PF: > { %v914_v1 = vld [vmem:[%s1359_s2 + $0x18] sm:$0xff]  ;;  %v913_v2 = vld [vmem:[%s1359_s2 + $0x10] sm:$0xff]  ;;  %v912_v3 = vld [vmem:[%s1359_s2 + $0x8] sm:$0xff]  ;;  %vm370_vm1 = vcmask 523264   ;;  %vm597_vm2 = vcmask 261120   ;;  %p899_p3 = scmp.ne.s32.totalorder %s1091_s18, 1 }
  0x40   : > { %399 = vmatpush.bf16.msra.mxu0 %v914_v1  ;;  %923 = vmatpush.bf16.msra.mxu3 %v914_v1  ;;  %v911_v4 = vld [vmem:[%s1359_s2] sm:$0xff]  ;;  %v908_v6 = vld [vmem:[%s1229_s14 + $0x28] sm:$0xff]  ;;  %v909_v8 = vld [vmem:[%s1229_s14 + $0x30] sm:$0xff] }
  0x41   : > { %v903_v5 = vld [vmem:[%s1229_s14] sm:$0xff]  ;;  %v904_v7 = vld [vmem:[%s1229_s14 + $0x8] sm:$0xff]  ;;  %v905_v9 = vld [vmem:[%s1229_s14 + $0x10] sm:$0xff] }
  0x42   : > { %v910_v10 = vld [vmem:[%s1229_s14 + $0x38] sm:$0xff]  ;;  %v907_v12 = vld [vmem:[%s1229_s14 + $0x20] sm:$0xff]  ;;  %v916_v39 = vld [vmem:[%s1218_s11 + $0x8] sm:$0xff] }
  0x43   : > { %v906_v11 = vld [vmem:[%s1229_s14 + $0x18] sm:$0xff]  ;;  %v915_v37 = vld [vmem:[%s1218_s11] sm:$0xff]  ;;  %v920_v40 = vld [vmem:[%s1218_s11 + $0x28] sm:$0xff] }
  0x44   : > { %400 = vmatpush.bf16.msra.mxu0 %v913_v2  ;;  %924 = vmatpush.bf16.msra.mxu3 %v913_v2  ;;  %v919_v38 = vld [vmem:[%s1218_s11 + $0x20] sm:$0xff]  ;;  %v917_v41 = vld [vmem:[%s1218_s11 + $0x10] sm:$0xff]  ;;  %v918_v43 = vld [vmem:[%s1218_s11 + $0x18] sm:$0xff] }
  0x45   : > { %v921_v42 = vld [vmem:[%s1218_s11 + $0x30] sm:$0xff]  ;;  %v922_v44 = vld [vmem:[%s1218_s11 + $0x38] sm:$0xff]  ;;  %v444_v45 = vld [vmem:[#allocation2] sm:$0xff] }
  0x46   : > { %v452_v48 = vld [vmem:[#allocation2 + $0x40] sm:$0xff]  ;;  %v445_v50 = vld [vmem:[#allocation2 + $0x8] sm:$0xff]  ;;  %v446_v56 = vld [vmem:[#allocation2 + $0x10] sm:$0xff] }
  0x47   : > { %v453_v54 = vld [vmem:[#allocation2 + $0x48] sm:$0xff]  ;;  %v454_v60 = vld [vmem:[#allocation2 + $0x50] sm:$0xff]  ;;  %v447_v62 = vld [vmem:[#allocation2 + $0x18] sm:$0xff] }
  0x48   : > { %401 = vmatpush.bf16.msra.mxu0 %v912_v3  ;;  %925 = vmatpush.bf16.msra.mxu3 %v912_v3  ;;  %v455_v2 = vld [vmem:[#allocation2 + $0x58] sm:$0xff] }
  0x4c   : > { %402 = vmatpush.bf16.msra.mxu0 %v911_v4  ;;  %926 = vmatpush.bf16.msra.mxu3 %v911_v4  ;;  %v448_v4 = vld [vmem:[#allocation2 + $0x20] sm:$0xff] }
  0x4f   : > { %859 = vmatmul.msk.bf16.vlgmr.msra.gmra.mxu0 %vm370_vm1, %v903_v5  ;;  %864 = vmatmul.msk.bf16.vlgmr.msra.gmra.mxu3 %vm370_vm1, %v908_v6 }
  0x5f   : > { %860 = vmatmul.msk.bf16.gmra.mxu0 %vm370_vm1, %v904_v7  ;;  %865 = vmatmul.msk.bf16.gmra.mxu3 %vm370_vm1, %v909_v8  ;;  %v456_v8 = vld [vmem:[#allocation2 + $0x60] sm:$0xff] }
  0x6f   : > { %861 = vmatmul.msk.bf16.gmra.mxu0 %vm370_vm1, %v905_v9  ;;  %866 = vmatmul.msk.bf16.gmra.mxu3 %vm370_vm1, %v910_v10  ;;  %v449_v10 = vld [vmem:[#allocation2 + $0x28] sm:$0xff] }
  0x7f   : > { %862 = vmatmul.msk.bf16.gmra.mxu0 %vm370_vm1, %v906_v11 }
  0x8f   : > { %863 = vmatmul.msk.bf16.gmra.mxu0 %vm370_vm1, %v907_v12 }
  0xcc   : > { %v404_v13 = vpop.f32.mrf.mxu0 }
  0xd2   : > { %v429_v14 = vpop.f32.mrf.mxu3 }
  0xd4   : > { %v406_v15 = vpop.f32.mrf.mxu0 }
  0xd5   : > { %v476_v16 = vpack.c.bf16 %v406_v15, %v404_v13 }
  0xda   : > { %v431_v17 = vpop.f32.mrf.mxu3 }
  0xdb   : > { %v481_v29 = vpack.c.bf16 %v431_v17, %v429_v14  ;;  %v457_v14 = vld [vmem:[#allocation2 + $0x68] sm:$0xff] }
  0xdc   : > { %v409_v18 = vpop.f32.mrf.mxu0 }
  0xe2   : > { %v434_v19 = vpop.f32.mrf.mxu3 }
  0xe4   : > { %v411_v20 = vpop.f32.mrf.mxu0 }
  0xe5   : > { %v477_v36 = vpack.c.bf16 %v411_v20, %v409_v18  ;;  %v458_v20 = vld [vmem:[#allocation2 + $0x70] sm:$0xff] }
  0xea   : > { %v436_v21 = vpop.f32.mrf.mxu3 }
  0xeb   : > { %v482_v28 = vpack.c.bf16 %v436_v21, %v434_v19 }
  0xec   : > { %v414_v22 = vpop.f32.mrf.mxu0 }
  0xf2   : > { %v439_v23 = vpop.f32.mrf.mxu3 }
  0xf4   : > { %v416_v24 = vpop.f32.mrf.mxu0 }
  0xf5   : > { %v478_v35 = vpack.c.bf16 %v416_v24, %v414_v22  ;;  %v451_v22 = vld [vmem:[#allocation2 + $0x38] sm:$0xff] }
  0xfa   : > { %v441_v25 = vpop.f32.mrf.mxu3 }
  0xfb   : > { %v483_v26 = vpack.c.bf16 %v441_v25, %v439_v23 }
  0xfc   : > { %v419_v27 = vpop.f32.mrf.mxu0 }
  0xfd   : > { %532 = vmatpush.bf16.msra.mxu1 %v483_v26  ;;  %927 = vmatpush.bf16.msra.mxu2 %v483_v26  ;;  %v459_v26 = vld [vmem:[#allocation2 + $0x78] sm:$0xff] }
 0x101   : > { %533 = vmatpush.bf16.msra.mxu1 %v482_v28  ;;  %928 = vmatpush.bf16.msra.mxu2 %v482_v28 }
 0x104   : > { %v421_v30 = vpop.f32.mrf.mxu0 }
 0x105   : > { %534 = vmatpush.bf16.msra.mxu1 %v481_v29  ;;  %929 = vmatpush.bf16.msra.mxu2 %v481_v29  ;;  %v479_v34 = vpack.c.bf16 %v421_v30, %v419_v27 }
 0x10c   : > { %v424_v31 = vpop.f32.mrf.mxu0 }
 0x114   : > { %v426_v32 = vpop.f32.mrf.mxu0 }
 0x115   : > { %v480_v33 = vpack.c.bf16 %v426_v32, %v424_v31 }
 0x117   : > { %535 = vmatpush.bf16.msra.mxu1 %v480_v33  ;;  %930 = vmatpush.bf16.msra.mxu2 %v480_v33 }
 0x11b   : > { %536 = vmatpush.bf16.msra.mxu1 %v479_v34  ;;  %931 = vmatpush.bf16.msra.mxu2 %v479_v34 }
 0x11f   : > { %537 = vmatpush.bf16.msra.mxu1 %v478_v35  ;;  %932 = vmatpush.bf16.msra.mxu2 %v478_v35 }
 0x123   : > { %538 = vmatpush.bf16.msra.mxu1 %v477_v36  ;;  %933 = vmatpush.bf16.msra.mxu2 %v477_v36 }
 0x127   : > { %539 = vmatpush.bf16.msra.mxu1 %v476_v16  ;;  %934 = vmatpush.bf16.msra.mxu2 %v476_v16  ;;  %v450_v16 = vld [vmem:[#allocation2 + $0x30] sm:$0xff] }
 0x12a   : > { %540 = vmatmul.bf16.vlgmr.msra.gmra.mxu1 %v915_v37  ;;  %560 = vmatmul.bf16.vlgmr.msra.gmra.mxu2 %v919_v38 }
 0x13a   : > { %545 = vmatmul.bf16.gmra.mxu1 %v916_v39  ;;  %565 = vmatmul.bf16.gmra.mxu2 %v920_v40 }
 0x14a   : > { %550 = vmatmul.bf16.gmra.mxu1 %v917_v41  ;;  %570 = vmatmul.bf16.gmra.mxu2 %v921_v42 }
 0x15a   : > { %555 = vmatmul.bf16.gmra.mxu1 %v918_v43  ;;  %575 = vmatmul.bf16.gmra.mxu2 %v922_v44 }
 0x1a7   : > { %v541_v46 = vpop.f32.mrf.mxu1 }
 0x1a8   : > { %v581_v47 = vadd.f32 %v541_v46, %v444_v45 }
 0x1aa   : > { %598 = vst.msk [vmem:[#allocation2] sm:$0xff] %vm597_vm2, %v581_v47 }
 0x1ad   : > { %v561_v49 = vpop.f32.mrf.mxu2 }
 0x1ae   : > { %v589_v51 = vadd.f32 %v561_v49, %v452_v48 }
 0x1af   : > { %v543_v52 = vpop.f32.mrf.mxu1 }
 0x1b0   : > { %606 = vst.msk [vmem:[#allocation2 + $0x40] sm:$0xff] %vm597_vm2, %v589_v51  ;;  %v582_v53 = vadd.f32 %v543_v52, %v445_v50 }
 0x1b2   : > { %599 = vst.msk [vmem:[#allocation2 + $0x8] sm:$0xff] %vm597_vm2, %v582_v53 }
 0x1b5   : > { %v563_v55 = vpop.f32.mrf.mxu2 }
 0x1b6   : > { %v590_v57 = vadd.f32 %v563_v55, %v453_v54 }
 0x1b7   : > { %v546_v58 = vpop.f32.mrf.mxu1 }
 0x1b8   : > { %607 = vst.msk [vmem:[#allocation2 + $0x48] sm:$0xff] %vm597_vm2, %v590_v57  ;;  %v583_v59 = vadd.f32 %v546_v58, %v446_v56 }
 0x1ba   : > { %600 = vst.msk [vmem:[#allocation2 + $0x10] sm:$0xff] %vm597_vm2, %v583_v59 }
 0x1bd   : > { %v566_v61 = vpop.f32.mrf.mxu2 }
 0x1be   : > { %v591_v63 = vadd.f32 %v566_v61, %v454_v60 }
 0x1bf   : > { %v548_v0 = vpop.f32.mrf.mxu1 }
 0x1c0   : > { %608 = vst.msk [vmem:[#allocation2 + $0x50] sm:$0xff] %vm597_vm2, %v591_v63  ;;  %v584_v1 = vadd.f32 %v548_v0, %v447_v62 }
 0x1c2   : > { %601 = vst.msk [vmem:[#allocation2 + $0x18] sm:$0xff] %vm597_vm2, %v584_v1 }
 0x1c5   : > { %v568_v3 = vpop.f32.mrf.mxu2 }
 0x1c6   : > { %v592_v5 = vadd.f32 %v568_v3, %v455_v2 }
 0x1c7   : > { %v551_v6 = vpop.f32.mrf.mxu1 }
 0x1c8   : > { %609 = vst.msk [vmem:[#allocation2 + $0x58] sm:$0xff] %vm597_vm2, %v592_v5  ;;  %v585_v7 = vadd.f32 %v551_v6, %v448_v4 }
 0x1ca   : > { %602 = vst.msk [vmem:[#allocation2 + $0x20] sm:$0xff] %vm597_vm2, %v585_v7 }
 0x1cd   : > { %v571_v9 = vpop.f32.mrf.mxu2 }
 0x1ce   : > { %v593_v11 = vadd.f32 %v571_v9, %v456_v8 }
 0x1cf   : > { %v553_v12 = vpop.f32.mrf.mxu1 }
 0x1d0   : > { %610 = vst.msk [vmem:[#allocation2 + $0x60] sm:$0xff] %vm597_vm2, %v593_v11  ;;  %v586_v13 = vadd.f32 %v553_v12, %v449_v10 }
 0x1d2   : > { %603 = vst.msk [vmem:[#allocation2 + $0x28] sm:$0xff] %vm597_vm2, %v586_v13 }
 0x1d5   : > { %v573_v15 = vpop.f32.mrf.mxu2 }
 0x1d6   : > { %v594_v17 = vadd.f32 %v573_v15, %v457_v14 }
 0x1d7   : > { %v556_v18 = vpop.f32.mrf.mxu1 }
 0x1d8   : > { %611 = vst.msk [vmem:[#allocation2 + $0x68] sm:$0xff] %vm597_vm2, %v594_v17  ;;  %v587_v19 = vadd.f32 %v556_v18, %v450_v16 }
 0x1da   : > { %604 = vst.msk [vmem:[#allocation2 + $0x30] sm:$0xff] %vm597_vm2, %v587_v19 }
 0x1dd   : > { %v576_v21 = vpop.f32.mrf.mxu2 }
 0x1de   : > { %v595_v23 = vadd.f32 %v576_v21, %v458_v20 }
 0x1df   : > { %v558_v24 = vpop.f32.mrf.mxu1 }
 0x1e0   : > { %612 = vst.msk [vmem:[#allocation2 + $0x70] sm:$0xff] %vm597_vm2, %v595_v23  ;;  %v588_v25 = vadd.f32 %v558_v24, %v451_v22 }
 0x1e2   : > { %605 = vst.msk [vmem:[#allocation2 + $0x38] sm:$0xff] %vm597_vm2, %v588_v25 }
 0x1e4   : > { %617 = sbr.rel (%p899_p3) target bundleno = 513 (0x201), region = 48 }
 0x1e5   : > { %v578_v27 = vpop.f32.mrf.mxu2 }
 0x1e6   : > { %v596_v28 = vadd.f32 %v578_v27, %v459_v26 }
 0x1e8   : > { %613 = vst.msk [vmem:[#allocation2 + $0x78] sm:$0xff] %vm597_vm2, %v596_v28 }
 0x1e9   : > { %v618_v29 = vld [vmem:[#allocation2] sm:$0xff]  ;;  %v619_v31 = vld [vmem:[#allocation2 + $0x8] sm:$0xff]  ;;  %v620_v32 = vld [vmem:[#allocation2 + $0x10] sm:$0xff]  ;;  %vm686_vm3 = vcmask 257024  }
 0x1ea   : > { %v1010_v30 = vld [vmem:[%s1360_s3] ss:$0 sm:$0xff]  ;;  %v621_v33 = vld [vmem:[#allocation2 + $0x18] sm:$0xff]  ;;  %v623_v39 = vld [vmem:[#allocation2 + $0x28] sm:$0xff] }
 0x1eb   : > { %v638_v34 = vadd.f32 %v1010_v30, %v618_v29  ;;  %v639_v35 = vadd.f32 %v1010_v30, %v619_v31  ;;  %v640_v36 = vadd.f32 %v1010_v30, %v620_v32  ;;  %v641_v37 = vadd.f32 %v1010_v30, %v621_v33  ;;  %v622_v38 = vld [vmem:[#allocation2 + $0x20] sm:$0xff]  ;;  %v624_v40 = vld [vmem:[#allocation2 + $0x30] sm:$0xff]  ;;  %v625_v44 = vld [vmem:[#allocation2 + $0x38] sm:$0xff] }
 0x1ec   : > { %v642_v41 = vadd.f32 %v1010_v30, %v622_v38  ;;  %v643_v42 = vadd.f32 %v1010_v30, %v623_v39  ;;  %v644_v43 = vadd.f32 %v1010_v30, %v624_v40  ;;  %v626_v49 = vld [vmem:[#allocation2 + $0x40] sm:$0xff]  ;;  %v645_v53 = vadd.f32 %v1010_v30, %v625_v44  ;;  %v627_v54 = vld [vmem:[#allocation2 + $0x48] sm:$0xff]  ;;  %v628_v55 = vld [vmem:[#allocation2 + $0x50] sm:$0xff] }
 0x1ed   : > { %v654_v45 = vmax.f32 %v638_v34, 0.0  ;;  %v655_v46 = vmax.f32 %v639_v35, 0.0  ;;  %v656_v47 = vmax.f32 %v640_v36, 0.0  ;;  %v657_v48 = vmax.f32 %v641_v37, 0.0  ;;  %v629_v56 = vld [vmem:[#allocation2 + $0x58] sm:$0xff]  ;;  %v630_v60 = vld [vmem:[#allocation2 + $0x60] sm:$0xff] }
 0x1ee   : > { %v658_v50 = vmax.f32 %v642_v41, 0.0  ;;  %v659_v51 = vmax.f32 %v643_v42, 0.0  ;;  %v660_v52 = vmax.f32 %v644_v43, 0.0  ;;  %v631_v61 = vld [vmem:[#allocation2 + $0x68] sm:$0xff]  ;;  %v661_v0 = vmax.f32 %v645_v53, 0.0  ;;  %v632_v1 = vld [vmem:[#allocation2 + $0x70] sm:$0xff] }
 0x1ef   : > { %v670_v57 = vpack.c.bf16 %v654_v45, %v654_v45  ;;  %v671_v58 = vpack.c.bf16 %v655_v46, %v655_v46  ;;  %v672_v59 = vpack.c.bf16 %v656_v47, %v656_v47  ;;  %v673_v62 = vpack.c.bf16 %v657_v48, %v657_v48  ;;  %v633_v6 = vld [vmem:[#allocation2 + $0x78] sm:$0xff] }
 0x1f0   : > { %v674_v63 = vpack.c.bf16 %v658_v50, %v658_v50  ;;  %v646_v2 = vadd.f32 %v1010_v30, %v626_v49  ;;  %v647_v3 = vadd.f32 %v1010_v30, %v627_v54  ;;  %v648_v4 = vadd.f32 %v1010_v30, %v628_v55 }
 0x1f1   : > { %687 = vst.msk [vmem:[%s1234_s29] sm:$0xf] %vm686_vm3, %v670_v57  ;;  %v649_v5 = vadd.f32 %v1010_v30, %v629_v56  ;;  %v675_v7 = vpack.c.bf16 %v659_v51, %v659_v51  ;;  %v676_v8 = vpack.c.bf16 %v660_v52, %v660_v52  ;;  %v650_v9 = vadd.f32 %v1010_v30, %v630_v60 }
 0x1f2   : > { %688 = vst.msk [vmem:[%s1234_s29 + $0x4] sm:$0xf] %vm686_vm3, %v671_v58  ;;  %v651_v10 = vadd.f32 %v1010_v30, %v631_v61  ;;  %v662_v11 = vmax.f32 %v646_v2, 0.0  ;;  %v663_v12 = vmax.f32 %v647_v3, 0.0  ;;  %v664_v13 = vmax.f32 %v648_v4, 0.0 }
 0x1f3   : > { %689 = vst.msk [vmem:[%s1234_s29 + $0x8] sm:$0xf] %vm686_vm3, %v672_v59  ;;  %v652_v14 = vadd.f32 %v1010_v30, %v632_v1  ;;  %v677_v15 = vpack.c.bf16 %v661_v0, %v661_v0  ;;  %v665_v16 = vmax.f32 %v649_v5, 0.0  ;;  %v653_v17 = vadd.f32 %v1010_v30, %v633_v6 }
 0x1f4   : > { %690 = vst.msk [vmem:[%s1234_s29 + $0xc] sm:$0xf] %vm686_vm3, %v673_v62  ;;  %v678_v18 = vpack.c.bf16 %v662_v11, %v662_v11  ;;  %v666_v19 = vmax.f32 %v650_v9, 0.0  ;;  %v679_v20 = vpack.c.bf16 %v663_v12, %v663_v12  ;;  %v667_v21 = vmax.f32 %v651_v10, 0.0 }
 0x1f5   : > { %691 = vst.msk [vmem:[%s1234_s29 + $0x10] sm:$0xf] %vm686_vm3, %v674_v63  ;;  %v680_v22 = vpack.c.bf16 %v664_v13, %v664_v13  ;;  %v668_v23 = vmax.f32 %v652_v14, 0.0  ;;  %v681_v24 = vpack.c.bf16 %v665_v16, %v665_v16  ;;  %v669_v25 = vmax.f32 %v653_v17, 0.0 }
 0x1f6   : > { %692 = vst.msk [vmem:[%s1234_s29 + $0x14] sm:$0xf] %vm686_vm3, %v675_v7  ;;  %v682_v26 = vpack.c.bf16 %v666_v19, %v666_v19  ;;  %v683_v27 = vpack.c.bf16 %v667_v21, %v667_v21 }
 0x1f7   : > { %693 = vst.msk [vmem:[%s1234_s29 + $0x18] sm:$0xf] %vm686_vm3, %v676_v8  ;;  %v684_v28 = vpack.c.bf16 %v668_v23, %v668_v23  ;;  %v685_v29 = vpack.c.bf16 %v669_v25, %v669_v25 }
 0x1f8   : > { %694 = vst.msk [vmem:[%s1234_s29 + $0x1c] sm:$0xf] %vm686_vm3, %v677_v15 }
 0x1f9   : > { %695 = vst.msk [vmem:[%s1234_s29 + $0x20] sm:$0xf] %vm686_vm3, %v678_v18 }
 0x1fa   : > { %696 = vst.msk [vmem:[%s1234_s29 + $0x24] sm:$0xf] %vm686_vm3, %v679_v20 }
 0x1fb   : > { %697 = vst.msk [vmem:[%s1234_s29 + $0x28] sm:$0xf] %vm686_vm3, %v680_v22 }
 0x1fc   : > { %698 = vst.msk [vmem:[%s1234_s29 + $0x2c] sm:$0xf] %vm686_vm3, %v681_v24 }
 0x1fd   : > { %699 = vst.msk [vmem:[%s1234_s29 + $0x30] sm:$0xf] %vm686_vm3, %v682_v26 }
 0x1fe   : > { %700 = vst.msk [vmem:[%s1234_s29 + $0x34] sm:$0xf] %vm686_vm3, %v683_v27 }
 0x1ff   : > { %701 = vst.msk [vmem:[%s1234_s29 + $0x38] sm:$0xf] %vm686_vm3, %v684_v28 }
 0x200   : > { %702 = vst.msk [vmem:[%s1234_s29 + $0x3c] sm:$0xf] %vm686_vm3, %v685_v29 }
 0x201 PF: > { %s17_s22 = sadd.s32 1, %s1107_s22   ;;  %s1366_s25 = sld [smem:[#allocation6_spill]] }
 0x202   : > { %p14_p4 = scmp.ge.s32.totalorder %s17_s22, 6   ;;  %s1367_s15 = smov %s1083_s16 }
 0x203   : > { %s1368_s16 = smov %s1087_s17  ;;  %s1369_s17 = smov %s1205_s9 }
 0x204   : > { %s1370_s18 = smov %s1099_s20  ;;  %s1371_s19 = smov %s1103_s21 }
 0x205   : > { %s1372_s20 = smov %s1375_s24  ;;  %16 = sbr.rel (!%p14_p4) target bundleno = 5 (0x5), region = 87 }
 0x207   : > { %s1373_s21 = smov %s1366_s25 }
 0x20a   :  { %725 = vsyncpa [#allocation4], 1 }
 0x20b   :  { %727 = vsyncpa [#allocation4 + $0x1], 1 }

</bundles_post_ra>
